<compile_context>
chip_gen: v6e
topology: v6e:2x2x1
jax: 0.10.0
libtpu: 0.0.40
codegen_flags: <defaults>
</compile_context>

<pallas_src>
import math
import functools

import jax
import jax.numpy as jnp
from jax import lax
from jax.experimental import pallas as pl
from jax.experimental.pallas import tpu as pltpu


# 48 MiB scoped VMEM: fits v7x's 64 MiB physical VMEM; raise to 64-96 MiB on v5e/v6e.
_VMEM_LIMIT = 48 * 1024 * 1024
_SQRT_2_OVER_PI = 0.7978845608028654


def _gelu(x):
    # tanh-approx GELU (same formula in the JAX reference so the comparison is exact).
    return 0.5 * x * (1.0 + jnp.tanh(_SQRT_2_OVER_PI * (x + 0.044715 * x * x * x)))


def _pick_tile(dim, cap, align):
    """Largest tile <= cap that divides `dim` and is `align`-aligned; else the full dim."""
    if dim <= cap:
        return dim
    start = cap - (cap % align)
    for t in range(start, 0, -align):
        if dim % t == 0:
            return t
    return dim


def _pick_head_block(num_heads):
    """Heads per attention grid step.  The block's second-to-last dim (head axis) must be
    a multiple of 8 or the full nH ((8,128) rule); prefer the smallest legal group."""
    for h in range(8, num_heads, 8):
        if num_heads % h == 0:
            return h
    return num_heads


# ------------------------------ linear kernel -------------------------------


def _linear_kernel(x_ref, w_ref, b_ref, o_ref, acc_ref, *, activation):
    # x: (tm, tk); w: (tk, tn) pre-transposed (in, out); b: (1, tn) f32; o: (tm, tn)
    @pl.when(pl.program_id(2) == 0)
    def _init():
        acc_ref[...] = jnp.zeros_like(acc_ref)

    acc_ref[...] += jnp.dot(x_ref[...], w_ref[...], preferred_element_type=jnp.float32)

    @pl.when(pl.program_id(2) == pl.num_programs(2) - 1)
    def _finalize():
        y = acc_ref[...] + b_ref[...]
        if activation == "gelu":
            y = _gelu(y)
        o_ref[...] = y.astype(o_ref.dtype)


def linear(x2d, w, b, *, activation=None, tm_cap=256, tn_cap=512, tk_cap=768):
    """y = x2d @ w + b (+ optional fused GELU).  `w` is pre-transposed to (in, out)."""
    M, K = x2d.shape
    Kw, N = w.shape
    assert K == Kw, (x2d.shape, w.shape)
    tm = _pick_tile(M, tm_cap, 8)
    tn = _pick_tile(N, tn_cap, 128)
    tk = _pick_tile(K, tk_cap, 128)
    grid = (M // tm, N // tn, K // tk)
    return pl.pallas_call(
        functools.partial(_linear_kernel, activation=activation),
        out_shape=jax.ShapeDtypeStruct((M, N), x2d.dtype),
        grid=grid,
        in_specs=[
            pl.BlockSpec((tm, tk), lambda i, j, k: (i, k)),
            pl.BlockSpec((tk, tn), lambda i, j, k: (k, j)),
            pl.BlockSpec((1, tn), lambda i, j, k: (0, j)),
        ],
        out_specs=pl.BlockSpec((tm, tn), lambda i, j, k: (i, j)),
        scratch_shapes=[pltpu.VMEM((tm, tn), jnp.float32)],
        compiler_params=pltpu.CompilerParams(
            dimension_semantics=("parallel", "parallel", "arbitrary"),
            vmem_limit_bytes=_VMEM_LIMIT,
        ),
    )(x2d, w, b.reshape(1, N))


# ------------------- linear + residual + LayerNorm (fused) -------------------


def _linear_res_ln_kernel(x_ref, w_ref, b_ref, res_ref, g_ref, bt_ref, o_ref, acc_ref,
                          *, eps):
    # x: (tm, tk); w: (tk, H); b/g/bt: (1, H) f32; res: (tm, H); o: (tm, H)
    @pl.when(pl.program_id(1) == 0)
    def _init():
        acc_ref[...] = jnp.zeros_like(acc_ref)

    acc_ref[...] += jnp.dot(x_ref[...], w_ref[...], preferred_element_type=jnp.float32)

    @pl.when(pl.program_id(1) == pl.num_programs(1) - 1)
    def _finalize():
        y = acc_ref[...] + b_ref[...] + res_ref[...].astype(jnp.float32)
        mu = jnp.mean(y, axis=-1, keepdims=True)
        c = y - mu
        var = jnp.mean(c * c, axis=-1, keepdims=True)
        o_ref[...] = (c * lax.rsqrt(var + eps) * g_ref[...] + bt_ref[...]).astype(o_ref.dtype)


def linear_residual_ln(x2d, w, b, res2d, gamma, beta, *, eps=1e-12,
                       tm_cap=256, tk_cap=768):
    """LayerNorm(x2d @ w + b + res2d) with the add+LN fused into the matmul finalize."""
    M, K = x2d.shape
    Kw, N = w.shape
    assert K == Kw and res2d.shape == (M, N)
    tm = _pick_tile(M, tm_cap, 8)
    tk = _pick_tile(K, tk_cap, 128)
    grid = (M // tm, K // tk)
    return pl.pallas_call(
        functools.partial(_linear_res_ln_kernel, eps=eps),
        out_shape=jax.ShapeDtypeStruct((M, N), res2d.dtype),
        grid=grid,
        in_specs=[
            pl.BlockSpec((tm, tk), lambda i, k: (i, k)),
            pl.BlockSpec((tk, N), lambda i, k: (k, 0)),
            pl.BlockSpec((1, N), lambda i, k: (0, 0)),
            pl.BlockSpec((tm, N), lambda i, k: (i, 0)),
            pl.BlockSpec((1, N), lambda i, k: (0, 0)),
            pl.BlockSpec((1, N), lambda i, k: (0, 0)),
        ],
        out_specs=pl.BlockSpec((tm, N), lambda i, k: (i, 0)),
        scratch_shapes=[pltpu.VMEM((tm, N), jnp.float32)],
        compiler_params=pltpu.CompilerParams(
            dimension_semantics=("parallel", "arbitrary"),
            vmem_limit_bytes=_VMEM_LIMIT,
        ),
    )(x2d, w, b.reshape(1, N), res2d, gamma.reshape(1, N), beta.reshape(1, N))


# ------------------------------ LayerNorm kernel ------------------------------


def _ln_kernel(x_ref, g_ref, b_ref, o_ref, *, eps):
    y = x_ref[...].astype(jnp.float32)
    mu = jnp.mean(y, axis=-1, keepdims=True)
    c = y - mu
    var = jnp.mean(c * c, axis=-1, keepdims=True)
    o_ref[...] = (c * lax.rsqrt(var + eps) * g_ref[...] + b_ref[...]).astype(o_ref.dtype)


def layer_norm(x2d, gamma, beta, *, eps=1e-12, tm_cap=512):
    M, H = x2d.shape
    tm = _pick_tile(M, tm_cap, 8)
    return pl.pallas_call(
        functools.partial(_ln_kernel, eps=eps),
        out_shape=jax.ShapeDtypeStruct((M, H), x2d.dtype),
        grid=(M // tm,),
        in_specs=[
            pl.BlockSpec((tm, H), lambda i: (i, 0)),
            pl.BlockSpec((1, H), lambda i: (0, 0)),
            pl.BlockSpec((1, H), lambda i: (0, 0)),
        ],
        out_specs=pl.BlockSpec((tm, H), lambda i: (i, 0)),
        compiler_params=pltpu.CompilerParams(
            dimension_semantics=("parallel",),
            vmem_limit_bytes=_VMEM_LIMIT,
        ),
    )(x2d, gamma.reshape(1, H), beta.reshape(1, H))


# ---------------------------- attention kernel ------------------------------


def _mha_kernel(q_ref, k_ref, v_ref, mask_ref, ctx_ref, *prob_refs, scale, hblk):
    # q_ref: (tq, hblk, dH); k_ref/v_ref: (S, hblk, dH); mask_ref: (1, S) additive.
    mask = mask_ref[...]  # (1, S) f32, broadcasts over query rows
    for hh in range(hblk):  # static unroll over the heads in this group
        q = q_ref[:, hh, :] * scale                      # (tq, dH) pre-scaled query
        k = k_ref[:, hh, :]                              # (S, dH)
        v = v_ref[:, hh, :]                              # (S, dH)
        # q . k^T without materializing any transpose: contract last dims of both.
        s = lax.dot_general(q, k, dimension_numbers=(((1,), (1,)), ((), ())),
                            preferred_element_type=jnp.float32)   # (tq, S)
        s = s + mask
        # Numerically stable exact softmax in f32.
        m = jnp.max(s, axis=-1, keepdims=True)
        e = jnp.exp(s - m)
        p = e / jnp.sum(e, axis=-1, keepdims=True)
        # TODO(synk): training-mode attention-prob dropout not implemented (eval identity).
        ctx = jnp.dot(p.astype(v.dtype), v, preferred_element_type=jnp.float32)  # (tq, dH)
        ctx_ref[:, hh, :] = ctx.astype(ctx_ref.dtype)    # merged (tq, hblk, dH) layout
        if prob_refs:
            prob_refs[0][hh, :, :] = p.astype(prob_refs[0].dtype)


def multi_head_attention(qkv5, mask_b1s, *, scale, output_attentions=False):
    """qkv5: (B, S, 3, nH, dH) fused QKV (planes q/k/v); mask_b1s: (B, 1, S) additive.
    Returns (context (B, S, nH, dH) in qkv5.dtype, probs (B, nH, S, S) f32 or None)."""
    B, S, _, nH, dH = qkv5.shape
    hblk = _pick_head_block(nH)
    tq = _pick_tile(S, 128, 8)         # query tiling bounds live f32 score tiles
    grid = (B, nH // hblk, S // tq)

    q_spec = pl.BlockSpec((None, tq, None, hblk, dH), lambda b, h, qi: (b, qi, 0, h, 0))
    k_spec = pl.BlockSpec((None, S, None, hblk, dH), lambda b, h, qi: (b, 0, 1, h, 0))
    v_spec = pl.BlockSpec((None, S, None, hblk, dH), lambda b, h, qi: (b, 0, 2, h, 0))
    m_spec = pl.BlockSpec((None, 1, S), lambda b, h, qi: (b, 0, 0))

    out_shape = [jax.ShapeDtypeStruct((B, S, nH, dH), qkv5.dtype)]
    out_specs = [pl.BlockSpec((None, tq, hblk, dH), lambda b, h, qi: (b, qi, h, 0))]
    if output_attentions:
        out_shape.append(jax.ShapeDtypeStruct((B, nH, S, S), jnp.float32))
        out_specs.append(pl.BlockSpec((None, hblk, tq, S), lambda b, h, qi: (b, h, qi, 0)))

    outs = pl.pallas_call(
        functools.partial(_mha_kernel, scale=scale, hblk=hblk),
        out_shape=tuple(out_shape),
        grid=grid,
        in_specs=[q_spec, k_spec, v_spec, m_spec],
        out_specs=tuple(out_specs),
        compiler_params=pltpu.CompilerParams(
            dimension_semantics=("parallel", "parallel", "parallel"),
            vmem_limit_bytes=_VMEM_LIMIT,
        ),
    )(qkv5, qkv5, qkv5, mask_b1s)

    ctx = outs[0]
    probs = outs[1] if output_attentions else None
    return ctx, probs


# ------------------------------ model forward --------------------------------


def _cross_entropy(logits, labels):
    logz = jax.nn.logsumexp(logits, axis=-1)
    gold = jnp.take_along_axis(logits, labels[:, None], axis=-1)[:, 0]
    return jnp.mean(logz - gold)


def prepare_params(raw, dtype=jnp.bfloat16):
    """One-time parameter prep: stack Wq/Wk/Wv into a fused QKV weight, pre-transpose all
    weights to (in, out) layout, and cast weight/embedding storage to `dtype` (bf16 by
    default for MXU-native operands and half the HBM traffic).  Biases and LN params stay
    f32; pooler/classifier stay f32 (they run in plain JAX)."""
    def wt(w):
        return jnp.asarray(w.T, dtype)

    def f32(v):
        return jnp.asarray(v, jnp.float32)

    layers = []
    for lp in raw["layers"]:
        Wqkv = jnp.concatenate([lp["Wq"], lp["Wk"], lp["Wv"]], axis=0)  # (3H, H)
        layers.append({
            "Wqkv": jnp.asarray(Wqkv.T, dtype),                          # (H, 3H)
            "bqkv": f32(jnp.concatenate([lp["bq"], lp["bk"], lp["bv"]])),
            "Wo": wt(lp["Wo"]), "bo": f32(lp["bo"]),
            "ln1_g": f32(lp["attn_ln_g"]), "ln1_b": f32(lp["attn_ln_b"]),
            "Wi": wt(lp["Wi"]), "bi": f32(lp["bi"]),
            "Wf": wt(lp["Wf"]), "bf": f32(lp["bf"]),
            "ln2_g": f32(lp["out_ln_g"]), "ln2_b": f32(lp["out_ln_b"]),
        })
    emb = raw["embeddings"]
    return {
        "config": raw["config"], "dtype": dtype,
        "embeddings": {"tok": jnp.asarray(emb["tok"], dtype),
                       "pos": jnp.asarray(emb["pos"], dtype),
                       "typ": jnp.asarray(emb["typ"], dtype),
                       "ln_g": f32(emb["ln_g"]), "ln_b": f32(emb["ln_b"])},
        "layers": layers,
        "pooler": {"W": jnp.asarray(raw["pooler"]["W"].T, jnp.float32),
                   "b": f32(raw["pooler"]["b"])},
        "classifier": {"W": jnp.asarray(raw["classifier"]["W"].T, jnp.float32),
                       "b": f32(raw["classifier"]["b"])},
    }


def bert_forward(prep, input_ids, attention_mask=None, token_type_ids=None,
                 position_ids=None, labels=None, output_attentions=False):
    """BERTForSequenceClassification.forward (eval mode) built on the Pallas kernels."""
    cfg = prep["config"]
    H, nH = cfg["hidden_size"], cfg["num_heads"]
    dH = H // nH
    act_dtype = prep["dtype"]
    B, S = input_ids.shape
    M = B * S

    if attention_mask is None:
        attention_mask = jnp.ones((B, S), jnp.float32)
    # Additive key mask (B, 1, S); broadcast over heads and queries inside the kernel.
    # TODO(synk): 3-D (B,S,S) masks would need an (S,S) mask block; 2-D masks only here.
    mask_b1s = ((1.0 - attention_mask.astype(jnp.float32)) * -10000.0).reshape(B, 1, S)
    if token_type_ids is None:
        token_type_ids = jnp.zeros_like(input_ids)
    if position_ids is None:
        position_ids = jnp.arange(S)

    # --- embeddings (gathers left to XLA; LayerNorm in a Pallas kernel) ---
    # TODO(synk): embedding gathers could become a Pallas scalar-prefetch gather kernel.
    emb = prep["embeddings"]
    x = (jnp.take(emb["tok"], input_ids, axis=0)
         + jnp.take(emb["typ"], token_type_ids, axis=0)
         + jnp.take(emb["pos"], position_ids, axis=0)[None, :, :])
    hidden2d = layer_norm(x.astype(act_dtype).reshape(M, H), emb["ln_g"], emb["ln_b"])
    # TODO(synk): training-mode dropout not implemented (eval identity).

    scale = 1.0 / math.sqrt(dH)
    attns = []
    for lp in prep["layers"]:
        # Fused QKV projection: activations read from HBM once.
        qkv2d = linear(hidden2d, lp["Wqkv"], lp["bqkv"])
        qkv5 = qkv2d.reshape(B, S, 3, nH, dH)              # pure reshape, no transpose
        ctx, probs = multi_head_attention(qkv5, mask_b1s, scale=scale,
                                          output_attentions=output_attentions)
        # Wo projection + residual add + LayerNorm fused into one kernel.
        attn2d = linear_residual_ln(ctx.reshape(M, H), lp["Wo"], lp["bo"],
                                    hidden2d, lp["ln1_g"], lp["ln1_b"])
        inter2d = linear(attn2d, lp["Wi"], lp["bi"], activation="gelu")
        # Wf projection + residual add + LayerNorm fused into one kernel.
        hidden2d = linear_residual_ln(inter2d, lp["Wf"], lp["bf"],
                                      attn2d, lp["ln2_g"], lp["ln2_b"])
        if output_attentions:
            attns.append(probs)

    sequence_output = hidden2d.reshape(B, S, H)
    # Pooler + classifier: tiny (B,H) GEMMs -> plain JAX (Pallas blocks would be
    # sublane/lane-sparse; launch overhead dominates this work).
    cls = sequence_output[:, 0, :].astype(jnp.float32)
    pooled = jnp.tanh(cls @ prep["pooler"]["W"] + prep["pooler"]["b"])
    logits = pooled @ prep["classifier"]["W"] + prep["classifier"]["b"]

    out = {"sequence_output": sequence_output, "pooled_output": pooled, "logits": logits,
           "attentions": tuple(attns) if output_attentions else None}
    if labels is not None:
        out["loss"] = _cross_entropy(logits, labels)
    return out


# ------------------------------ JAX reference --------------------------------


def _layer_norm_ref(x, g, b, eps=1e-12):
    mu = jnp.mean(x, axis=-1, keepdims=True)
    var = jnp.mean((x - mu) ** 2, axis=-1, keepdims=True)
    return (x - mu) / jnp.sqrt(var + eps) * g + b


def reference_forward(raw, input_ids, attention_mask=None, token_type_ids=None,
                      position_ids=None, labels=None, output_attentions=False):
    cfg = raw["config"]
    H, nH = cfg["hidden_size"], cfg["num_heads"]
    dH = H // nH
    B, S = input_ids.shape
    if attention_mask is None:
        attention_mask = jnp.ones((B, S), jnp.float32)
    ext = (1.0 - attention_mask.astype(jnp.float32))[:, None, None, :] * -10000.0
    if token_type_ids is None:
        token_type_ids = jnp.zeros_like(input_ids)
    if position_ids is None:
        position_ids = jnp.arange(S)

    emb = raw["embeddings"]
    x = emb["tok"][input_ids] + emb["pos"][position_ids][None] + emb["typ"][token_type_ids]
    x = _layer_norm_ref(x, emb["ln_g"], emb["ln_b"])

    attns = []
    for lp in raw["layers"]:
        q = x @ lp["Wq"].T + lp["bq"]
        k = x @ lp["Wk"].T + lp["bk"]
        v = x @ lp["Wv"].T + lp["bv"]

        def sh(t):
            return t.reshape(B, S, nH, dH).transpose(0, 2, 1, 3)

        qh, kh, vh = sh(q), sh(k), sh(v)
        scores = jnp.einsum("bhqd,bhkd->bhqk", qh, kh) / math.sqrt(dH) + ext
        probs = jax.nn.softmax(scores, axis=-1)
        ctx = jnp.einsum("bhqk,bhkd->bhqd", probs, vh).transpose(0, 2, 1, 3).reshape(B, S, H)
        attn_out = ctx @ lp["Wo"].T + lp["bo"]
        attn_out = _layer_norm_ref(attn_out + x, lp["attn_ln_g"], lp["attn_ln_b"])
        inter = _gelu(attn_out @ lp["Wi"].T + lp["bi"])
        ffn = inter @ lp["Wf"].T + lp["bf"]
        x = _layer_norm_ref(ffn + attn_out, lp["out_ln_g"], lp["out_ln_b"])
        attns.append(probs)

    pooled = jnp.tanh(x[:, 0] @ raw["pooler"]["W"].T + raw["pooler"]["b"])
    logits = pooled @ raw["classifier"]["W"].T + raw["classifier"]["b"]
    out = {"sequence_output": x, "pooled_output": pooled, "logits": logits,
           "attentions": tuple(attns) if output_attentions else None}
    if labels is not None:
        out["loss"] = _cross_entropy(logits, labels)
    return out


# ---------------------------------- main --------------------------------------


def init_raw_params(key, cfg):
    H, I = cfg["hidden_size"], cfg["intermediate_size"]
    V, P, T, L = (cfg["vocab_size"], cfg["max_position_embeddings"],
                  cfg["type_vocab_size"], cfg["num_labels"])
    ks = iter(jax.random.split(key, 16 * cfg["num_layers"] + 16))

    def w(shape, s=None):
        if s is None:
            s = 1.0 / math.sqrt(shape[-1])
        return jax.random.normal(next(ks), shape, jnp.float32) * s

    raw = {
        "config": cfg,
        "embeddings": {"tok": w((V, H)), "pos": w((P, H)), "typ": w((T, H)),
                       "ln_g": 1.0 + w((H,), 0.1), "ln_b": w((H,), 0.02)},
        "layers": [],
        "pooler": {"W": w((H, H)), "b": w((H,), 0.02)},
        "classifier": {"W": w((L, H)), "b": w((L,), 0.02)},
    }
    for _ in range(cfg["num_layers"]):
        raw["layers"].append({
            "Wq": w((H, H)), "bq": w((H,), 0.02),
            "Wk": w((H, H)), "bk": w((H,), 0.02),
            "Wv": w((H, H)), "bv": w((H,), 0.02),
            "Wo": w((H, H)), "bo": w((H,), 0.02),
            "attn_ln_g": 1.0 + w((H,), 0.1), "attn_ln_b": w((H,), 0.02),
            "Wi": w((I, H)), "bi": w((I,), 0.02),
            "Wf": w((H, I)), "bf": w((H,), 0.02),
            "out_ln_g": 1.0 + w((H,), 0.1), "out_ln_b": w((H,), 0.02),
        })
    return raw


if __name__ == "__main__":
    cfg = dict(vocab_size=64, hidden_size=32, num_layers=2, num_heads=4,
               intermediate_size=64, max_position_embeddings=16, type_vocab_size=2,
               num_labels=2)
    B, S = 2, 8

    key = jax.random.PRNGKey(0)
    kp, kid, klab = jax.random.split(key, 3)
    raw = init_raw_params(kp, cfg)

    input_ids = jax.random.randint(kid, (B, S), 0, cfg["vocab_size"])
    token_type_ids = jnp.concatenate(
        [jnp.zeros((B, S // 2), jnp.int32), jnp.ones((B, S // 2), jnp.int32)], axis=1)
    attention_mask = jnp.ones((B, S), jnp.float32).at[1, -2:].set(0.0)
    labels = jax.random.randint(klab, (B,), 0, cfg["num_labels"])

    # --- f32 configuration: tight comparison against the pure-JAX reference ---
    prep32 = prepare_params(raw, dtype=jnp.float32)
    out = bert_forward(prep32, input_ids, attention_mask, token_type_ids, labels=labels)
    jax.block_until_ready(out["logits"])

    out_attn = bert_forward(prep32, input_ids, attention_mask, token_type_ids,
                            output_attentions=True)
    jax.block_until_ready(out_attn["attentions"][-1])

    ref = reference_forward(raw, input_ids, attention_mask, token_type_ids,
                            labels=labels, output_attentions=True)

    tol = dict(rtol=2e-3, atol=2e-3)
    assert out["sequence_output"].shape == (B, S, cfg["hidden_size"])
    assert out["logits"].shape == (B, cfg["num_labels"])
    assert out["attentions"] is None
    assert jnp.allclose(out["sequence_output"], ref["sequence_output"], **tol)
    assert jnp.allclose(out["pooled_output"], ref["pooled_output"], **tol)
    assert jnp.allclose(out["logits"], ref["logits"], **tol)
    assert jnp.allclose(out["loss"], ref["loss"], **tol)
    for p, rp in zip(out_attn["attentions"], ref["attentions"]):
        assert p.shape == (B, cfg["num_heads"], S, S)
        assert jnp.allclose(p, rp, **tol)
    assert jnp.allclose(out_attn["logits"], ref["logits"], **tol)

    # --- bf16 production configuration: smoke test (shapes / finiteness only) ---
    prep16 = prepare_params(raw)  # bf16 storage + bf16 MXU operands, f32 accumulation
    out16 = bert_forward(prep16, input_ids, attention_mask, token_type_ids, labels=labels)
    jax.block_until_ready(out16["logits"])
    assert out16["sequence_output"].shape == (B, S, cfg["hidden_size"])
    assert out16["logits"].shape == (B, cfg["num_labels"])
    assert bool(jnp.all(jnp.isfinite(out16["logits"].astype(jnp.float32))))
    assert bool(jnp.isfinite(out16["loss"]))

    print("KERNEL_OK")
</pallas_src>

<mosaic_0001>
module attributes {stable_mosaic.version = 11 : i64} {
  func.func @_ln_kernel(%arg0: i32, %arg1: memref<16x32xf32, #tpu.memory_space<vmem>>, %arg2: memref<1x32xf32, #tpu.memory_space<vmem>>, %arg3: memref<1x32xf32, #tpu.memory_space<vmem>>, %arg4: memref<16x32xf32, #tpu.memory_space<vmem>>) attributes {dimension_semantics = [#tpu.dimension_semantics<parallel>], iteration_bounds = array<i64: 1>, scalar_prefetch = 0 : i64, scratch_operands = 0 : i64, tpu.core_type = #tpu.core_type<tc>, window_params = [{transform_indices = @transform_0, window_bounds = array<i64: 16, 32>}, {pipeline_mode = #tpu.pipeline_mode<synchronous>, transform_indices = @transform_1, window_bounds = array<i64: 1, 32>}, {pipeline_mode = #tpu.pipeline_mode<synchronous>, transform_indices = @transform_2, window_bounds = array<i64: 1, 32>}, {transform_indices = @transform_3, window_bounds = array<i64: 16, 32>}]} {
    %c0 = arith.constant 0 : index
    %c0_0 = arith.constant 0 : index
    %0 = vector.load %arg1[%c0, %c0_0] : memref<16x32xf32, #tpu.memory_space<vmem>>, vector<16x32xf32>
    %cst = arith.constant dense<0.000000e+00> : vector<16xf32>
    %1 = vector.multi_reduction <add>, %0, %cst [1] : vector<16x32xf32> to vector<16xf32>
    %2 = vector.shape_cast %1 : vector<16xf32> to vector<16x1xf32>
    %cst_1 = arith.constant 3.200000e+01 : f32
    %3 = vector.broadcast %cst_1 : f32 to vector<16x1xf32>
    %4 = arith.divf %2, %3 : vector<16x1xf32>
    %5 = vector.broadcast %4 : vector<16x1xf32> to vector<16x32xf32>
    %6 = arith.subf %0, %5 : vector<16x32xf32>
    %7 = arith.mulf %6, %6 : vector<16x32xf32>
    %cst_2 = arith.constant dense<0.000000e+00> : vector<16xf32>
    %8 = vector.multi_reduction <add>, %7, %cst_2 [1] : vector<16x32xf32> to vector<16xf32>
    %9 = vector.shape_cast %8 : vector<16xf32> to vector<16x1xf32>
    %cst_3 = arith.constant 3.200000e+01 : f32
    %10 = vector.broadcast %cst_3 : f32 to vector<16x1xf32>
    %11 = arith.divf %9, %10 : vector<16x1xf32>
    %cst_4 = arith.constant 9.99999996E-13 : f32
    %12 = vector.broadcast %cst_4 : f32 to vector<16x1xf32>
    %13 = arith.addf %11, %12 : vector<16x1xf32>
    %14 = math.rsqrt %13 : vector<16x1xf32>
    %15 = vector.broadcast %14 : vector<16x1xf32> to vector<16x32xf32>
    %16 = arith.mulf %6, %15 : vector<16x32xf32>
    %c0_5 = arith.constant 0 : index
    %c0_6 = arith.constant 0 : index
    %17 = vector.load %arg2[%c0_5, %c0_6] : memref<1x32xf32, #tpu.memory_space<vmem>>, vector<1x32xf32>
    %18 = vector.broadcast %17 : vector<1x32xf32> to vector<16x32xf32>
    %19 = arith.mulf %16, %18 : vector<16x32xf32>
    %c0_7 = arith.constant 0 : index
    %c0_8 = arith.constant 0 : index
    %20 = vector.load %arg3[%c0_7, %c0_8] : memref<1x32xf32, #tpu.memory_space<vmem>>, vector<1x32xf32>
    %21 = vector.broadcast %20 : vector<1x32xf32> to vector<16x32xf32>
    %22 = arith.addf %19, %21 : vector<16x32xf32>
    %c0_9 = arith.constant 0 : index
    %c0_10 = arith.constant 0 : index
    %23 = vector.load %arg4[%c0_9, %c0_10] : memref<16x32xf32, #tpu.memory_space<vmem>>, vector<16x32xf32>
    tpu.vector_store %arg4[%c0_9, %c0_10], %22 {strides = array<i32>} : memref<16x32xf32, #tpu.memory_space<vmem>>, vector<16x32xf32>,
    return
  }
  func.func @transform_0(%arg0: i32) -> (i32, i32) {
    %c0_i32 = arith.constant 0 : i32
    %c0_i32_0 = arith.constant 0 : i32
    return %arg0, %c0_i32 : i32, i32
  }
  func.func @transform_1(%arg0: i32) -> (i32, i32) {
    %c0_i32 = arith.constant 0 : i32
    %c0_i32_0 = arith.constant 0 : i32
    %c0_i32_1 = arith.constant 0 : i32
    return %c0_i32, %c0_i32_0 : i32, i32
  }
  func.func @transform_2(%arg0: i32) -> (i32, i32) {
    %c0_i32 = arith.constant 0 : i32
    %c0_i32_0 = arith.constant 0 : i32
    %c0_i32_1 = arith.constant 0 : i32
    return %c0_i32, %c0_i32_0 : i32, i32
  }
  func.func @transform_3(%arg0: i32) -> (i32, i32) {
    %c0_i32 = arith.constant 0 : i32
    %c0_i32_0 = arith.constant 0 : i32
    return %arg0, %c0_i32 : i32, i32
  }
}

</mosaic_0001>

<bundles_post_ra>
// kernel: tpu_custom_call.1
= control target key start
LH: loop header
LB: loop body
LE: loop exit
PB: predicated region body
PF: predicated region fallthrough
CT: control target
= control target key end

     0   :  { %8 = vsyncpa [#allocation3], 0  ;;  %s198_s0 = inlined_call_operand.hbm [shape: f32[16,32], index: 0, kind: input, shape index: {}]   ;;  %s199_s1 = inlined_call_operand.vmem [shape: f32[1,32], index: 1, kind: input, shape index: {}]   ;;  %s200_s2 = inlined_call_operand.vmem [shape: f32[1,32], index: 2, kind: input, shape index: {}]   ;;  %s201_s3 = inlined_call_operand.hbm [shape: f32[16,32], index: 3, kind: output, shape index: {}]  }
   0x1   :  { %9 = vsyncpa [#allocation4], 0  ;;  %s150_s12 = smov [#allocation2]  }
   0x2   :  { %s15_s13 = sshll.u32 %s150_s12, 4  ;;  %s16_s13 = int_to_ptr.vmem [resolvable:$true] %s15_s13 }
   0x3   :  { %s114_s14 = scalar_lea.vmem %s16_s13, 256  ;;  %p119_p1 = scmp.lt.s32.totalorder %s16_s13, %s16_s13 }
   0x4   :  { %p115_p0 = scmp.ne.s32.totalorder %s16_s13, %s114_s14  ;;  %p120_p2 = scmp.lt.s32.totalorder %s114_s14, %s114_s14 }
   0x6   :  { %p121_p3 = por %p120_p2, %p119_p1 }
   0x8   :  { %p122_p4 = pnand %p121_p3, %p115_p0 }
   0xa   :  { %125 = shalt.err (!%p122_p4)
}
   0xb   :  { %s151_s15 = smov 128   ;;  %s152_s16 = smov 8  }
   0xc   :  { %21 = dma.hbm_to_vmem [thread:$0]  %s198_s0, 256, %s16_s13, [#allocation3], %s151_s15, %s151_s15, %s152_s16  }
   0xd   :  { %146 = dma.done.wait [#allocation3], 256  }
   0xe   :  { %147 = vsyncadd [#allocation3], 4294967040  ;;  %vm31_vm0 = vcmask 261120   ;;  %v29_v0 = vld [vmem:[#allocation2] sm:$0xff]  ;;  %v30_v1 = vld [vmem:[#allocation2 + $0x8] sm:$0xff]  ;;  %s153_s22 = smov [#allocation5]  }
   0xf   :  { %v32_v2 = vsel %vm31_vm0, %v29_v0, 0.0  ;;  %v35_v3 = vsel %vm31_vm0, %v30_v1, 0.0  ;;  %v96_v21 = vld [vmem:[%s199_s1] ss:$0 sm:$0xff]  ;;  %s84_s23 = sshll.u32 %s153_s22, 4  ;;  %s85_s23 = int_to_ptr.vmem [resolvable:$true] %s84_s23 }
  0x10   :  { %33 = vadd.xlane.f32.xlu0 %v32_v2  ;;  %v97_v23 = vld [vmem:[%s200_s2] ss:$0 sm:$0xff]  ;;  %s126_s24 = scalar_lea.vmem %s85_s23, 256  ;;  %p131_p6 = scmp.lt.s32.totalorder %s85_s23, %s85_s23 }
  0x11   :  { %p127_p5 = scmp.ne.s32.totalorder %s85_s23, %s126_s24  ;;  %p132_p7 = scmp.lt.s32.totalorder %s126_s24, %s126_s24 }
  0x13   :  { %p133_p8 = por %p132_p7, %p131_p6 }
  0x14   :  { %36 = vadd.xlane.f32.xlu0 %v35_v3 }
  0x15   :  { %p134_p9 = pnand %p133_p8, %p127_p5 }
  0x99   :  { %v34_v4 = vpop.xlane.xlu0 %33 }
  0x9a   :  { %v39_v5 = vmul.f32 0.03125, %v34_v4 }
  0x9c   :  { %v41_v6 = vsub.f32 %v29_v0, %v39_v5 }
  0x9d   :  { %v37_v7 = vpop.xlane.xlu0 %36 }
  0x9e   :  { %v40_v8 = vmul.f32 0.03125, %v37_v7  ;;  %v43_v9 = vmul.f32 %v41_v6, %v41_v6 }
  0xa0   :  { %v42_v10 = vsub.f32 %v30_v1, %v40_v8  ;;  %v45_v11 = vsel %vm31_vm0, %v43_v9, 0.0 }
  0xa1   :  { %46 = vadd.xlane.f32.xlu1 %v45_v11 }
  0xa2   :  { %v44_v12 = vmul.f32 %v42_v10, %v42_v10 }
  0xa4   :  { %v48_v13 = vsel %vm31_vm0, %v44_v12, 0.0 }
  0xa5   :  { %49 = vadd.xlane.f32.xlu1 %v48_v13 }
 0x12a   :  { %v47_v14 = vpop.xlane.xlu1 %46 }
 0x12b   :  { %v51_v15 = vmul.f32 0.03125, %v47_v14 }
 0x12d   :  { %v53_v16 = vadd.f32 1e-12, %v51_v15 }
 0x12e   :  { %v50_v17 = vpop.xlane.xlu1 %49 }
 0x12f   :  { %102 = vrsqrt.f32 %v53_v16  ;;  %v52_v18 = vmul.f32 0.03125, %v50_v17 }
 0x131   :  { %v54_v19 = vadd.f32 1e-12, %v52_v18 }
 0x133   :  { %104 = vrsqrt.f32 %v54_v19 }
 0x13c   :  { %v103_v20 = vpop.eup %102 }
 0x13d   :  { %v57_v22 = vmul.f32 %v103_v20, %v41_v6 }
 0x13f   :  { %v66_v24 = vmul.f32 %v96_v21, %v57_v22 }
 0x140   :  { %v105_v25 = vpop.eup %104 }
 0x141   :  { %v58_v26 = vmul.f32 %v105_v25, %v42_v10  ;;  %v75_v27 = vadd.f32 %v97_v23, %v66_v24 }
 0x143   :  { %v67_v28 = vmul.f32 %v96_v21, %v58_v26  ;;  %77 = vst.msk [vmem:[#allocation5] sm:$0xff] %vm31_vm0, %v75_v27 }
 0x145   :  { %v76_v29 = vadd.f32 %v97_v23, %v67_v28 }
 0x147   :  { %78 = vst.msk [vmem:[#allocation5 + $0x8] sm:$0xff] %vm31_vm0, %v76_v29 }
 0x148   :  { %137 = shalt.err (!%p134_p9)
}
 0x149   :  { %90 = dma.vmem_to_hbm [thread:$0]  %s85_s23, 256, %s201_s3, [#allocation4], %s151_s15, %s151_s15, %s152_s16  }
 0x14a   :  { %148 = dma.done.wait [#allocation4], 256  }
 0x14b   :  { %149 = vsyncadd [#allocation4], 4294967040 }
 0x14c   :  { %94 = vsyncpa [#allocation3], 1 }
 0x14d   :  { %95 = vsyncpa [#allocation4], 1 }

</bundles_post_ra>
